<compile_context>
chip_gen: v6e
topology: v6e:2x2x1
jax: 0.10.0
libtpu: 0.0.40
codegen_flags: <defaults>
</compile_context>

<pallas_src>
import jax
import jax.numpy as jnp
from jax.experimental import pallas as pl
from jax.experimental.pallas import tpu as pltpu


def _pixelnorm_kernel(x_ref, o_ref):
    # block: (Bt, C, T) -- reduce over the channel axis (axis=1) only.
    x = x_ref[...].astype(jnp.float32)
    ms = jnp.mean(x * x, axis=1, keepdims=True)      # (Bt, 1, T)
    inv = jax.lax.rsqrt(ms + 1e-8)                    # EUP rsqrt (free slot)
    o_ref[...] = (x * inv).astype(o_ref.dtype)


def _pixel_norm_xla(x):
    # Plain-XLA path for tiny / degenerate shapes.
    xf = x.astype(jnp.float32)
    ms = jnp.mean(jnp.square(xf), axis=1, keepdims=True)
    return (xf * jax.lax.rsqrt(ms + 1e-8)).astype(x.dtype)


def _round_up(a, b):
    return (a + b - 1) // b * b


def pixel_norm(x):
    """x: (N, C, H, W) -- matches PyTorch NCHW PixelNorm semantics exactly."""
    N, C, H, W = x.shape
    HW = H * W
    itemsize = jnp.dtype(x.dtype).itemsize

    # Tiny spatial maps: a lane-dense 128-wide block can't be formed; XLA
    # fusion is already optimal there.
    if HW < 128:
        return _pixel_norm_xla(x)

    # --- Generation-aware VMEM budget -------------------------------------
    vmem_cap = 64 * 1024 * 1024                      # conservative default (v7x-class)
    try:
        info = pltpu.get_tpu_info()
        vmem_cap = int(getattr(info, "vmem_capacity_bytes", vmem_cap))
    except Exception:
        pass
    # Scoped limit we explicitly request; pipeline footprint targets 75% of it,
    # leaving headroom for compiler internals / extra temporaries.
    vmem_limit = int(min(vmem_cap // 2, 32 * 1024 * 1024))
    budget = int(vmem_limit * 3 // 4)

    # --- Per-block VMEM accounting (incl. sublane padding & f32 temps) ----
    sub_io = 8 * max(1, 4 // itemsize)               # sublane tile rows: f32->8, bf16->16
    c_pad_io = _round_up(C, sub_io)
    c_pad_f32 = _round_up(C, 8)

    def _pipeline_bytes(bt, t):
        io_blk = bt * c_pad_io * t * itemsize        # one in OR out VMEM buffer
        f32_blk = bt * c_pad_f32 * t * 4             # one full-block f32 temporary
        # 2x double-buffered (in + out)  +  ~2 live f32 temporaries in-kernel.
        return 4 * io_blk + 2 * f32_blk

    # Pathological case (huge C): even the minimal block blows the budget.
    if _pipeline_bytes(1, 128) > budget:
        return _pixel_norm_xla(x)

    # --- Tile selection -----------------------------------------------------
    # Lane tile t: multiple of 128, as large as the budget allows (bt=1),
    # capped by the largest 128-multiple that fits inside HW.
    t_cap = (HW // 128) * 128
    per_lane = _pipeline_bytes(1, 1)
    t = min(t_cap, max(128, (budget // per_lane) // 128 * 128))

    # Batch tile bt: once t covers the whole lane cap, grow the batch tile
    # (for ANY C) to keep amortizing the fixed per-step cost.
    bt = 1
    if t >= t_cap:
        bt = max(1, min(N, budget // _pipeline_bytes(1, t)))

    # Keep >=2 grid points along a 'parallel' axis so both TensorCores (v7x
    # megacore) have work; a single split is enough for this mem-bound kernel.
    if pl.cdiv(N, bt) * pl.cdiv(HW, t) < 2:
        if t >= 256:
            t = max(128, (t // 2) // 128 * 128)
        elif bt >= 2:
            bt = (bt + 1) // 2

    grid = (pl.cdiv(N, bt), pl.cdiv(HW, t))
    x3 = x.reshape(N, C, HW)

    out3 = pl.pallas_call(
        _pixelnorm_kernel,
        out_shape=jax.ShapeDtypeStruct((N, C, HW), x.dtype),
        grid_spec=pltpu.PrefetchScalarGridSpec(
            num_scalar_prefetch=0,
            grid=grid,
            in_specs=[pl.BlockSpec((bt, C, t), lambda i, j: (i, 0, j))],
            out_specs=pl.BlockSpec((bt, C, t), lambda i, j: (i, 0, j)),
        ),
        # Both grid axes are fully independent; default double-buffering is
        # kept (larger blocks beat deeper pipelines for a streaming kernel).
        compiler_params=pltpu.CompilerParams(
            dimension_semantics=("parallel", "parallel"),
            vmem_limit_bytes=vmem_limit,
        ),
        cost_estimate=pl.CostEstimate(
            flops=3 * N * C * HW,
            transcendentals=N * HW,
            bytes_accessed=2 * N * C * HW * itemsize,
        ),
    )(x3)

    return out3.reshape(N, C, H, W)


def pixel_norm_ref(x):
    # Pure-JAX reference mirroring the PyTorch forward.
    xf = x.astype(jnp.float32)
    ms = jnp.mean(xf ** 2, axis=1, keepdims=True)
    return (xf * jax.lax.rsqrt(ms + 1e-8)).astype(x.dtype)


if __name__ == "__main__":
    key = jax.random.PRNGKey(0)

    # Primary test shape from the spec: (N=2, C=4, H=16, W=16) -> HW=256.
    x = jax.random.normal(key, (2, 4, 16, 16), dtype=jnp.float32)
    out = pixel_norm(x)
    jax.block_until_ready(out)
    ref = pixel_norm_ref(x)
    assert out.shape == x.shape and out.dtype == x.dtype
    assert jnp.allclose(out, ref, atol=1e-5, rtol=1e-5)

    # Secondary: larger C + bf16 I/O kept end-to-end (batch-folded block).
    x2 = jax.random.normal(jax.random.PRNGKey(0), (2, 64, 32, 32), dtype=jnp.bfloat16)
    out2 = pixel_norm(x2)
    jax.block_until_ready(out2)
    ref2 = pixel_norm_ref(x2)
    assert out2.shape == x2.shape and out2.dtype == x2.dtype
    assert jnp.allclose(out2.astype(jnp.float32), ref2.astype(jnp.float32),
                        atol=1e-2, rtol=1e-2)

    # Non-divisible spatial extent (HW = 12*12 = 144): exercises the cdiv /
    # masked-remainder path (t = 128, remainder block of 16 lanes).
    x3 = jax.random.normal(key, (3, 8, 12, 12), dtype=jnp.float32)
    out3 = pixel_norm(x3)
    jax.block_until_ready(out3)
    assert jnp.allclose(out3, pixel_norm_ref(x3), atol=1e-5, rtol=1e-5)

    # Tiny spatial map (HW = 64 < 128) -> XLA fallback path.
    x4 = jax.random.normal(key, (2, 4, 8, 8), dtype=jnp.float32)
    out4 = pixel_norm(x4)
    jax.block_until_ready(out4)
    assert jnp.allclose(out4, pixel_norm_ref(x4), atol=1e-5, rtol=1e-5)

    print("KERNEL_OK")
</pallas_src>

<mosaic_0001>
module attributes {stable_mosaic.version = 11 : i64} {
  func.func @_pixelnorm_kernel(%arg0: i32, %arg1: i32, %arg2: memref<2x4x128xf32, #tpu.memory_space<vmem>>, %arg3: memref<2x4x128xf32, #tpu.memory_space<vmem>>) attributes {dimension_semantics = [#tpu.dimension_semantics<parallel>, #tpu.dimension_semantics<parallel>], iteration_bounds = array<i64: 1, 2>, scalar_prefetch = 0 : i64, scratch_operands = 0 : i64, tpu.core_type = #tpu.core_type<tc>, window_params = [{transform_indices = @transform_0, window_bounds = array<i64: 2, 4, 128>}, {transform_indices = @transform_1, window_bounds = array<i64: 2, 4, 128>}]} {
    %c0 = arith.constant 0 : index
    %c0_0 = arith.constant 0 : index
    %c0_1 = arith.constant 0 : index
    %0 = vector.load %arg2[%c0, %c0_0, %c0_1] : memref<2x4x128xf32, #tpu.memory_space<vmem>>, vector<2x4x128xf32>
    %1 = arith.mulf %0, %0 : vector<2x4x128xf32>
    %cst = arith.constant dense<0.000000e+00> : vector<2x128xf32>
    %2 = vector.multi_reduction <add>, %1, %cst [1] : vector<2x4x128xf32> to vector<2x128xf32>
    %3 = vector.shape_cast %2 : vector<2x128xf32> to vector<2x1x128xf32>
    %cst_2 = arith.constant 4.000000e+00 : f32
    %4 = vector.broadcast %cst_2 : f32 to vector<2x1x128xf32>
    %5 = arith.divf %3, %4 : vector<2x1x128xf32>
    %cst_3 = arith.constant 9.99999993E-9 : f32
    %6 = vector.broadcast %cst_3 : f32 to vector<2x1x128xf32>
    %7 = arith.addf %5, %6 : vector<2x1x128xf32>
    %8 = math.rsqrt %7 : vector<2x1x128xf32>
    %9 = vector.broadcast %8 : vector<2x1x128xf32> to vector<2x4x128xf32>
    %10 = arith.mulf %0, %9 : vector<2x4x128xf32>
    %c0_4 = arith.constant 0 : index
    %c0_5 = arith.constant 0 : index
    %c0_6 = arith.constant 0 : index
    %11 = vector.load %arg3[%c0_4, %c0_5, %c0_6] : memref<2x4x128xf32, #tpu.memory_space<vmem>>, vector<2x4x128xf32>
    tpu.vector_store %arg3[%c0_4, %c0_5, %c0_6], %10 {strides = array<i32>} : memref<2x4x128xf32, #tpu.memory_space<vmem>>, vector<2x4x128xf32>,
    return
  }
  func.func @transform_0(%arg0: i32, %arg1: i32) -> (i32, i32, i32) {
    %c0_i32 = arith.constant 0 : i32
    %c0_i32_0 = arith.constant 0 : i32
    return %arg0, %c0_i32, %arg1 : i32, i32, i32
  }
  func.func @transform_1(%arg0: i32, %arg1: i32) -> (i32, i32, i32) {
    %c0_i32 = arith.constant 0 : i32
    %c0_i32_0 = arith.constant 0 : i32
    return %arg0, %c0_i32, %arg1 : i32, i32, i32
  }
}

</mosaic_0001>

<bundles_post_ra>
// kernel: tpu_custom_call.1
= control target key start
LH: loop header
LB: loop body
LE: loop exit
PB: predicated region body
PF: predicated region fallthrough
CT: control target
= control target key end

     0   :  { %6 = vsyncpa [#allocation3], 0  ;;  %s643_s0 = inlined_call_operand.hbm [shape: f32[2,4,256], index: 0, kind: input, shape index: {}]   ;;  %s644_s1 = inlined_call_operand.hbm [shape: f32[2,4,256], index: 1, kind: output, shape index: {}]  }
   0x1   :  { %8 = vsyncpa [#allocation3 + $0x1], 0 }
   0x2   :  { %9 = vsyncpa [#allocation4], 0 }
   0x3   :  { %11 = vsyncpa [#allocation4 + $0x1], 0  ;;  %s499_s6 = smov 0   ;;  %s501_s7 = smov 0  }
   0x4   :  { %s503_s8 = smov 0   ;;  %s505_s9 = smov 0  }
   0x5   :  { %s507_s10 = smov 0   ;;  %s509_s11 = smov 0  }
   0x6 LB: > { %s286_s12 = sadd.s32 4294967295, %s479_s11   ;;  %s287_s13 = sadd.s32 4294967294, %s479_s11   ;;  %s479_s11 = sphi %s509_s11, %s17_s11   ;;  %s475_s10 = sphi %s507_s10, %s655_s10   ;;  %s471_s9 = sphi %s505_s9, %s654_s9   ;;  %s467_s8 = sphi %s503_s8, %s653_s8   ;;  %s463_s7 = sphi %s501_s7, %s652_s7   ;;  %s459_s6 = sphi %s499_s6, %s651_s6  }
   0x7   : > { %s26_s14 = sadd.s32 1, %s475_s10  ;;  %s38_s15 = sadd.s32 1, %s467_s8 }
   0x8   : > { %p27_p0 = scmp.ge.s32.totalorder %s26_s14, 2  ;;  %p45_p1 = scmp.ne.s32.totalorder %s467_s8, %s463_s7 }
   0x9   : > { %p46_p2 = scmp.eq.s32.totalorder %s479_s11, 0  ;;  %p51_p3 = scmp.ne.s32.totalorder %s463_s7, %s459_s6 }
   0xa   : > { %s657_s14 = smov (%p27_p0, %s26_s14), 0  ;;  %p52_p5 = scmp.eq.s32.totalorder %s286_s12, 0 }
   0xb   : > { %p540_p4 = por %p46_p2, %p45_p1  ;;  %s34_s17 = ssub.s32 %s475_s10, %s657_s14 }
   0xc   : > { %p77_p6 = scmp.eq.s32.totalorder %s286_s12, 1  ;;  %p36_p7 = scmp.eq.s32.totalorder %s34_s17, 0 }
   0xd   : > { %p546_p8 = por %p52_p5, %p51_p3  ;;  %p83_p10 = scmp.eq.s32.totalorder %s287_s13, 1 }
   0xe   : > { %p550_p9 = por %p77_p6, %p45_p1  ;;  %p311_p13 = scmp.lt.s32.totalorder %s479_s11, 2 }
   0xf   : > { %s555_s20 = scalar_select %p36_p7, %s467_s8, %s38_s15  }
  0x10   : > { %p557_p11 = por %p83_p10, %p51_p3  ;;  %s103_s22 = sand.u32 1, %s467_s8  }
  0x11   : > { %s290_s23 = sshll.u32 %s103_s22, 3  ;;  %s291_s24 = sshll.u32 %s475_s10, 6 }
  0x12   : > { %s115_s27 = scalar_lea.hbm %s643_s0, %s291_s24  ;;  %s107_s28 = scalar_lea.vmem [#allocation2], %s290_s23 }
  0x13   : > { %s116_s29 = sshll.u32 %s107_s28, 4  ;;  %p570_p0 = pnand %p311_p13, %p540_p4  ;;  %s117_s29 = int_to_ptr.vmem [resolvable:$true] %s116_s29 }
  0x14   : > { %s104_s2 = scalar_lea.sflag [#allocation3], %s103_s22  ;;  %s384_s3 = scalar_lea.vmem %s117_s29, 128 }
  0x15   : > { %p373_p1 = pneg %p570_p0  ;;  %p385_p2 = scmp.ne.s32.totalorder %s117_s29, %s384_s3 }
  0x16   : > { %s481_s4 = smov [#allocation2]  }
  0x17   : > { %p387_p3 = pnand %p385_p2, %p373_p1  ;;  %s389_s5 = sshll.u32 %s481_s4, 4  ;;  %s390_s5 = int_to_ptr.vmem [resolvable:$false] %s389_s5 }
  0x18   : > { %s391_s12 = scalar_lea.vmem %s390_s5, 256  ;;  %p392_p6 = scmp.lt.s32.totalorder %s117_s29, %s390_s5 }
  0x19   : > { %p388_p5 = pneg %p387_p3  ;;  %p393_p7 = scmp.lt.s32.totalorder %s391_s12, %s384_s3 }
  0x1b   : > { %p394_p10 = por %p393_p7, %p392_p6 }
  0x1d   : > { %p395_p12 = pnand %p394_p10, %p388_p5 }
  0x1f   : > { %398 = shalt.err (!%p395_p12)
}
  0x20   : > { %s482_s13 = smov 128   ;;  %s483_s15 = smov 64  }
  0x21   : > { %s484_s16 = smov 4   ;;  %p292_p4 = scmp.ge.s32.totalorder %s479_s11, 1 }
  0x22   : > { %306 = dma.hbm_to_vmem [thread:$0]  (!%p570_p0), %s115_s27, 128, %s117_s29, %s104_s2, %s482_s13, %s483_s15, %s484_s16  }
  0x23   : > { %p124_p13 = scmp.lt.s32.totalorder %s479_s11, 3 }
  0x25   : > { %p125_p1 = pnand %p292_p4, %p124_p13 }
  0x26   : > { %s581_s17 = sand.u32 (!%p125_p1), 1, %s463_s7  }
  0x27   : > { %128 = sbr.rel (%p125_p1) target bundleno = 97 (0x61), region = 24  ;;  %s293_s22 = sshll.u32 (!%p125_p1), %s581_s17, 3 }
  0x28   : > { %s131_s23 = scalar_lea.sflag (!%p125_p1), [#allocation3], %s581_s17  ;;  %s134_s24 = scalar_lea.vmem (!%p125_p1), [#allocation2], %s293_s22 }
  0x2c   : > { %450 = dma.done.wait (%p546_p8), %s131_s23, 128  }
  0x2d   : > { %452 = vsyncadd (%p546_p8), %s131_s23, 4294967168  ;;  %v155_v0 = vld [vmem:[%s134_s24] sm:$0xf]  ;;  %vm159_vm0 = vcmask 1043456   ;;  %v156_v1 = vld [vmem:[%s134_s24 + $0x4] sm:$0xf] }
  0x2e   : > { %v157_v2 = vmul.f32 %v155_v0, %v155_v0  ;;  %v158_v3 = vmul.f32 %v156_v1, %v156_v1  ;;  %s152_s18 = scalar_lea.vmem [#allocation5], %s293_s22  ;;  %s296_s26 = sshll.u32 %s471_s9, 6 }
  0x2f   : > { %s201_s25 = sshll.u32 %s152_s18, 4  ;;  %s595_s29 = scalar_lea.hbm %s644_s1, %s296_s26  ;;  %s590_s25 = int_to_ptr.vmem [resolvable:$true] %s201_s25 }
  0x30   : > { %v160_v4 = vsel %vm159_vm0, %v157_v2, 0.0  ;;  %v167_v5 = vsel %vm159_vm0, %v158_v3, 0.0  ;;  %s186_s30 = scalar_lea.sflag [#allocation4], %s581_s17  ;;  %s399_s2 = scalar_lea.vmem %s590_s25, 128 }
  0x31   : > { %v161_v6 = vrot.slane %v160_v4, 4  ;;  %v168_v7 = vrot.slane %v167_v5, 4  ;;  %p400_p8 = scmp.ne.s32.totalorder %s590_s25, %s399_s2  ;;  %s485_s9 = smov [#allocation5]  }
  0x32   : > { %s403_s3 = sshll.u32 %s485_s9, 4  ;;  %s404_s3 = int_to_ptr.vmem [resolvable:$false] %s403_s3 }
  0x33   : > { %v162_v8 = vadd.f32 %v161_v6, %v160_v4  ;;  %v169_v9 = vadd.f32 %v168_v7, %v167_v5  ;;  %p401_p12 = pnand %p400_p8, %p550_p9  ;;  %s405_s4 = scalar_lea.vmem %s404_s3, 256 }
  0x34   : > { %p406_p2 = scmp.lt.s32.totalorder %s590_s25, %s404_s3  ;;  %p407_p3 = scmp.lt.s32.totalorder %s405_s4, %s399_s2 }
  0x35   : > { %v163_v10 = vrot.slane %v162_v8, 2  ;;  %v170_v11 = vrot.slane %v169_v9, 2  ;;  %p402_p0 = pneg %p401_p12 }
  0x36   : > { %p408_p5 = por %p407_p3, %p406_p2 }
  0x37   : > { %v164_v12 = vadd.f32 %v163_v10, %v162_v8  ;;  %v171_v13 = vadd.f32 %v170_v11, %v169_v9 }
  0x38   : > { %p409_p6 = pnand %p408_p5, %p402_p0 }
  0x39   : > { %v165_v14 = vrot.slane %v164_v12, 1  ;;  %v172_v15 = vrot.slane %v171_v13, 1 }
  0x3b   : > { %v166_v16 = vadd.f32 %v165_v14, %v164_v12  ;;  %v173_v17 = vadd.f32 %v172_v15, %v171_v13 }
  0x3d   : > { %v175_v18 = vmul.f32 0.25, %v166_v16  ;;  %v176_v19 = vmul.f32 0.25, %v173_v17 }
  0x3f   : > { %v177_v20 = vadd.f32 1e-08, %v175_v18  ;;  %v178_v21 = vadd.f32 1e-08, %v176_v19 }
  0x41   : > { %367 = vrsqrt.f32 %v177_v20 }
  0x42   : > { %369 = vrsqrt.f32 %v178_v21 }
  0x4e   : > { %v368_v22 = vpop.eup %367 }
  0x4f   : > { %v370_v23 = vpop.eup %369  ;;  %v181_v24 = vmul.f32 %v368_v22, %v155_v0 }
  0x50   : > { %v182_v25 = vmul.f32 %v370_v23, %v156_v1 }
  0x51   : > { %183 = vst [vmem:[%s152_s18] sm:$0xf] %v181_v24 }
  0x52   : > { %184 = vst [vmem:[%s152_s18 + $0x4] sm:$0xf] %v182_v25 }
  0x53   : > { %412 = shalt.err (!%p409_p6)
}
  0x54   : > { %s413_s5 = scalar_lea.hbm %s595_s29, 128  ;;  %s417_s15 = scalar_lea.hbm %s644_s1, 256 }
  0x55   : > { %p414_p7 = scmp.ne.s32.totalorder %s595_s29, %s413_s5  ;;  %p418_p13 = scmp.lt.s32.totalorder %s595_s29, %s644_s1 }
  0x56   : > { %p419_p1 = scmp.lt.s32.totalorder %s417_s15, %s413_s5 }
  0x57   : > { %p415_p10 = pnand %p414_p7, %p550_p9 }
  0x58   : > { %p420_p8 = por %p419_p1, %p418_p13 }
  0x59   : > { %p416_p4 = pneg %p415_p10 }
  0x5b   : > { %p421_p12 = pnand %p420_p8, %p416_p4 }
  0x5d   : > { %424 = shalt.err (!%p421_p12)
}
  0x5e   : > { %s486_s23 = smov 64   ;;  %s487_s24 = smov 128  }
  0x5f   : > { %s488_s18 = smov 4  }
  0x60   : > { %301 = dma.vmem_to_hbm [thread:$0]  (%p550_p9), %s590_s25, 128, %s595_s29, %s186_s30, %s486_s23, %s487_s24, %s488_s18  }
  0x61 PF: > { %s216_s26 = sand.u32 1, %s459_s6   ;;  %p650_p0 = scmp.ge.s32.totalorder %s479_s11, 2 }
  0x62   : > { %s217_s27 = scalar_lea.sflag [#allocation4], %s216_s26 }
  0x63   : > { %p308_p2 = pnand %p650_p0, %p557_p11 }
  0x65   : > { %p309_p3 = pneg %p308_p2 }
  0x67   : > { %454 = dma.done.wait (%p309_p3), %s217_s27, 128  }
  0x68   : > { %456 = vsyncadd (%p309_p3), %s217_s27, 4294967168  ;;  %s17_s11 = sadd.s32 1, %s479_s11   ;;  %s651_s6 = smov %s463_s7 }
  0x69   : > { %p14_p5 = scmp.ge.s32.totalorder %s17_s11, 4   ;;  %s652_s7 = smov %s467_s8 }
  0x6a   : > { %s653_s8 = smov %s555_s20  ;;  %s654_s9 = smov %s475_s10 }
  0x6b   : > { %s655_s10 = smov %s657_s14  ;;  %16 = sbr.rel (!%p14_p5) target bundleno = 6 (0x6), region = 69 }
  0x70   :  { %222 = vsyncpa [#allocation3], 1 }
  0x71   :  { %224 = vsyncpa [#allocation3 + $0x1], 1 }
  0x72   :  { %225 = vsyncpa [#allocation4], 1 }
  0x73   :  { %227 = vsyncpa [#allocation4 + $0x1], 1 }

</bundles_post_ra>
